<compile_context>
chip_gen: v5e
topology: v5e:2x2
jax: 0.10.0
libtpu: 0.0.40
codegen_flags: <defaults>
</compile_context>

<pallas_src>
from functools import partial

import jax
import jax.numpy as jnp
from jax.experimental import pallas as pl
from jax.experimental.pallas import tpu as pltpu


# ----------------------------------------------------------------------------
# Fused kernel: conv stack + position-wise MLP for one (BT, L, C) batch tile
# ----------------------------------------------------------------------------
def _make_fused_kernel(BT, L, C, k, num_layers):

    def dwconv_relu(hin, w_ck, b_c1, dilation, pad):
        # hin: (BT, C, L) f32, w_ck: (C, k) f32, b_c1: (C, 1) f32.
        # Symmetric zero pad (torch Conv1d padding=pad) built in-register;
        # each tap is a static lane-offset slice of the padded value.
        if pad > 0:
            zpad = jnp.zeros(hin.shape[:-1] + (pad,), jnp.float32)
            hp = jnp.concatenate([zpad, hin, zpad], axis=-1)   # (BT, C, L+2*pad)
        else:
            hp = hin
        acc = None
        for j in range(k):                                     # static tap loop
            start = j * dilation
            tap = hp[:, :, start:start + L]                    # lane shift (XLU)
            term = tap * w_ck[None, :, j:j + 1]                # per-channel weight
            acc = term if acc is None else acc + term
        return jnp.maximum(acc + b_c1[None], 0.0)              # bias + ReLU

    def kernel(x_ref, w1_ref, b1_ref, w2_ref, b2_ref,
               pw1_w_ref, pw1_b_ref, pw2_w_ref, pw2_b_ref, out_ref):
        xb = x_ref[...].astype(jnp.float32)                    # (BT, L, C)
        # Channels -> sublanes, sequence -> lanes.
        if BT == 1:
            h = xb.reshape(L, C).T.reshape(1, C, L)            # 2-D transpose
        else:
            h = jnp.swapaxes(xb, 1, 2)                         # (BT, C, L)

        for layer in range(num_layers):                        # static layer loop
            dilation = 2 ** layer
            rf = (k - 1) * dilation + 1
            pad = rf // 2
            resid = h
            h = dwconv_relu(h, w1_ref[layer], b1_ref[layer], dilation, pad)
            h = dwconv_relu(h, w2_ref[layer], b2_ref[layer], dilation, pad)
            h = h + resid                                      # act2(conv2) + resid

        # Position-wise 1x1-conv MLP: one transpose to channels-last, then two
        # batched MXU matmuls (bf16 inputs, f32 accumulation).
        if BT == 1:
            hm = h.reshape(C, L).T                             # (L, C)
        else:
            hm = jnp.swapaxes(h, 1, 2).reshape(BT * L, C)
        z = jnp.dot(hm.astype(jnp.bfloat16), pw1_w_ref[...],
                    preferred_element_type=jnp.float32)
        z = jnp.maximum(z + pw1_b_ref[...], 0.0)
        y = jnp.dot(z.astype(jnp.bfloat16), pw2_w_ref[...],
                    preferred_element_type=jnp.float32)
        y = y + pw2_b_ref[...]
        out_ref[...] = y.reshape(BT, L, C).astype(out_ref.dtype)

    return kernel


# ----------------------------------------------------------------------------
# Full model forward — single pallas_call over batch tiles
# ----------------------------------------------------------------------------
@partial(jax.jit, static_argnames=("batch_tile",))
def model_forward(x, params, batch_tile=1):
    """x: (B, L, C) -> (B, L, C), matching Depthwise_CausalConvolution_regression."""
    B, L, C = x.shape
    num_layers, k, _ = params["w1"].shape
    d_ff = params["pw1_w"].shape[1]
    bt = batch_tile
    assert B % bt == 0, "batch_tile must divide the batch size"

    # Wrapper-side layout plumbing (weight-only, tiny): conv taps as
    # (layers, C, k) / biases as (layers, C, 1) so the kernel broadcasts them
    # straight onto the (BT, C, L) tile; MXU weights pre-cast to bf16.
    w1_t = jnp.transpose(params["w1"], (0, 2, 1))
    w2_t = jnp.transpose(params["w2"], (0, 2, 1))
    b1_t = jnp.transpose(params["b1"], (0, 2, 1))
    b2_t = jnp.transpose(params["b2"], (0, 2, 1))
    pw1_w = params["pw1_w"].astype(jnp.bfloat16)
    pw2_w = params["pw2_w"].astype(jnp.bfloat16)

    kernel = _make_fused_kernel(bt, L, C, k, num_layers)

    flops = B * (num_layers * 2 * (2 * k + 2) * L * C + 4 * L * C * d_ff)
    bytes_accessed = (4 * 2 * B * L * C
                      + 4 * num_layers * 2 * (k + 1) * C
                      + 2 * 2 * C * d_ff + 4 * (d_ff + C))

    return pl.pallas_call(
        kernel,
        out_shape=jax.ShapeDtypeStruct((B, L, C), x.dtype),
        grid=(B // bt,),
        in_specs=[
            pl.BlockSpec((bt, L, C), lambda i: (i, 0, 0)),            # x batch tile
            pl.BlockSpec((num_layers, C, k), lambda i: (0, 0, 0)),    # conv1 taps
            pl.BlockSpec((num_layers, C, 1), lambda i: (0, 0, 0)),    # conv1 bias
            pl.BlockSpec((num_layers, C, k), lambda i: (0, 0, 0)),    # conv2 taps
            pl.BlockSpec((num_layers, C, 1), lambda i: (0, 0, 0)),    # conv2 bias
            pl.BlockSpec((C, d_ff), lambda i: (0, 0)),                # pw1 weight (bf16)
            pl.BlockSpec((1, d_ff), lambda i: (0, 0)),                # pw1 bias
            pl.BlockSpec((d_ff, C), lambda i: (0, 0)),                # pw2 weight (bf16)
            pl.BlockSpec((1, C), lambda i: (0, 0)),                   # pw2 bias
        ],
        out_specs=pl.BlockSpec((bt, L, C), lambda i: (i, 0, 0)),
        compiler_params=pltpu.CompilerParams(
            dimension_semantics=("parallel",),
            vmem_limit_bytes=32 * 1024 * 1024,
        ),
        cost_estimate=pl.CostEstimate(
            flops=int(flops), transcendentals=0,
            bytes_accessed=int(bytes_accessed)),
    )(x, w1_t, b1_t, w2_t, b2_t, pw1_w, params["pw1_b"], pw2_w, params["pw2_b"])


# ----------------------------------------------------------------------------
# Pure-JAX reference (mirrors PyTorch NCL semantics, full f32 precision)
# ----------------------------------------------------------------------------
def ref_forward(x, params):
    B, L, C = x.shape
    num_layers, k, _ = params["w1"].shape
    h = jnp.transpose(x, (0, 2, 1))                       # (B, C, L) == x.transpose(1,2)
    for i in range(num_layers):
        d = 2 ** i
        rf = (k - 1) * d + 1
        pad = rf // 2
        resid = h
        w1 = jnp.transpose(params["w1"][i], (1, 0))[:, None, :]   # (C, 1, k) torch layout
        w2 = jnp.transpose(params["w2"][i], (1, 0))[:, None, :]
        b1 = params["b1"][i, 0]
        b2 = params["b2"][i, 0]

        def dwconv(inp, w, b):
            y = jax.lax.conv_general_dilated(
                inp, w, window_strides=(1,), padding=[(pad, pad)],
                rhs_dilation=(d,), feature_group_count=C,
                dimension_numbers=("NCH", "OIH", "NCH"),
                precision=jax.lax.Precision.HIGHEST)
            return y[:, :, :L] + b[None, :, None]         # trim == the `remove` slice

        h1 = jnp.maximum(dwconv(resid, w1, b1), 0.0)
        h2 = jnp.maximum(dwconv(h1, w2, b2), 0.0)
        h = h2 + resid
    hcl = jnp.transpose(h, (0, 2, 1))                     # permute(0, 2, 1)
    z = jnp.maximum(
        jnp.matmul(hcl, params["pw1_w"], precision=jax.lax.Precision.HIGHEST)
        + params["pw1_b"][0], 0.0)
    return (jnp.matmul(z, params["pw2_w"], precision=jax.lax.Precision.HIGHEST)
            + params["pw2_b"][0])


# ----------------------------------------------------------------------------
# Deterministic synthetic parameters (arrays only — no Python ints in pytree)
# ----------------------------------------------------------------------------
def init_params(key, in_channels, kernel_size, num_layers, d_ff):
    k1, k2, k3, k4, k5, k6, k7, k8 = jax.random.split(key, 8)
    return {
        "w1": 0.3 * jax.random.normal(k1, (num_layers, kernel_size, in_channels), jnp.float32),
        "b1": 0.1 * jax.random.normal(k2, (num_layers, 1, in_channels), jnp.float32),
        "w2": 0.3 * jax.random.normal(k3, (num_layers, kernel_size, in_channels), jnp.float32),
        "b2": 0.1 * jax.random.normal(k4, (num_layers, 1, in_channels), jnp.float32),
        "pw1_w": 0.2 * jax.random.normal(k5, (in_channels, d_ff), jnp.float32),
        "pw1_b": 0.1 * jax.random.normal(k6, (1, d_ff), jnp.float32),
        "pw2_w": 0.2 * jax.random.normal(k7, (d_ff, in_channels), jnp.float32),
        "pw2_b": 0.1 * jax.random.normal(k8, (1, in_channels), jnp.float32),
    }


if __name__ == "__main__":
    # Small config consistent with the module's __init__ signature.
    B, L = 2, 16
    in_channels, kernel_size, num_layers, d_ff = 8, 3, 2, 32

    key = jax.random.PRNGKey(0)
    key, xk = jax.random.split(key)
    x = jax.random.normal(xk, (B, L, in_channels), jnp.float32)   # (batch, seq, channels)
    params = init_params(key, in_channels, kernel_size, num_layers, d_ff)

    out = jax.block_until_ready(model_forward(x, params))
    ref = ref_forward(x, params)

    assert out.shape == (B, L, in_channels)
    err = float(jnp.max(jnp.abs(out - ref)))
    # Tolerance sized for bf16 MXU inputs on the two position-wise matmuls
    # (the conv/residual path is exact f32); typical max-abs error is ~1e-2.
    assert jnp.allclose(out, ref, atol=5e-2, rtol=5e-2), f"max abs err = {err}"

    print("KERNEL_OK")
</pallas_src>

<mosaic_0001>
module attributes {stable_mosaic.version = 11 : i64} {
  func.func @kernel(%arg0: i32, %arg1: memref<1x16x8xf32, #tpu.memory_space<vmem>>, %arg2: memref<2x8x3xf32, #tpu.memory_space<vmem>>, %arg3: memref<2x8x1xf32, #tpu.memory_space<vmem>>, %arg4: memref<2x8x3xf32, #tpu.memory_space<vmem>>, %arg5: memref<2x8x1xf32, #tpu.memory_space<vmem>>, %arg6: memref<8x32xbf16, #tpu.memory_space<vmem>>, %arg7: memref<1x32xf32, #tpu.memory_space<vmem>>, %arg8: memref<32x8xbf16, #tpu.memory_space<vmem>>, %arg9: memref<1x8xf32, #tpu.memory_space<vmem>>, %arg10: memref<1x16x8xf32, #tpu.memory_space<vmem>>) attributes {dimension_semantics = [#tpu.dimension_semantics<parallel>], iteration_bounds = array<i64: 2>, scalar_prefetch = 0 : i64, scratch_operands = 0 : i64, tpu.core_type = #tpu.core_type<tc>, window_params = [{transform_indices = @transform_0, window_bounds = array<i64: 1, 16, 8>}, {pipeline_mode = #tpu.pipeline_mode<synchronous>, transform_indices = @transform_1, window_bounds = array<i64: 2, 8, 3>}, {pipeline_mode = #tpu.pipeline_mode<synchronous>, transform_indices = @transform_2, window_bounds = array<i64: 2, 8, 1>}, {pipeline_mode = #tpu.pipeline_mode<synchronous>, transform_indices = @transform_3, window_bounds = array<i64: 2, 8, 3>}, {pipeline_mode = #tpu.pipeline_mode<synchronous>, transform_indices = @transform_4, window_bounds = array<i64: 2, 8, 1>}, {pipeline_mode = #tpu.pipeline_mode<synchronous>, transform_indices = @transform_5, window_bounds = array<i64: 8, 32>}, {pipeline_mode = #tpu.pipeline_mode<synchronous>, transform_indices = @transform_6, window_bounds = array<i64: 1, 32>}, {pipeline_mode = #tpu.pipeline_mode<synchronous>, transform_indices = @transform_7, window_bounds = array<i64: 32, 8>}, {pipeline_mode = #tpu.pipeline_mode<synchronous>, transform_indices = @transform_8, window_bounds = array<i64: 1, 8>}, {transform_indices = @transform_9, window_bounds = array<i64: 1, 16, 8>}]} {
    %c0 = arith.constant 0 : index
    %c0_0 = arith.constant 0 : index
    %c0_1 = arith.constant 0 : index
    %0 = vector.load %arg1[%c0, %c0_0, %c0_1] : memref<1x16x8xf32, #tpu.memory_space<vmem>>, vector<1x16x8xf32>
    %1 = vector.shape_cast %0 : vector<1x16x8xf32> to vector<16x8xf32>
    %2 = tpu.transpose %1, [1, 0] : vector<16x8xf32> -> vector<8x16xf32>
    %3 = vector.shape_cast %2 : vector<8x16xf32> to vector<1x8x16xf32>
    %c0_2 = arith.constant 0 : index
    %c0_3 = arith.constant 0 : index
    %c0_4 = arith.constant 0 : index
    %4 = vector.load %arg2[%c0_2, %c0_3, %c0_4] : memref<2x8x3xf32, #tpu.memory_space<vmem>>, vector<1x8x3xf32>
    %5 = vector.shape_cast %4 : vector<1x8x3xf32> to vector<8x3xf32>
    %c0_5 = arith.constant 0 : index
    %c0_6 = arith.constant 0 : index
    %c0_7 = arith.constant 0 : index
    %6 = vector.load %arg3[%c0_5, %c0_6, %c0_7] : memref<2x8x1xf32, #tpu.memory_space<vmem>>, vector<1x8x1xf32>
    %7 = vector.shape_cast %6 : vector<1x8x1xf32> to vector<8x1xf32>
    %cst = arith.constant 0.000000e+00 : f32
    %8 = vector.broadcast %cst : f32 to vector<1x8x1xf32>
    %9 = tpu.concatenate %8, %3, %8 in 2 : vector<1x8x1xf32>, vector<1x8x16xf32>, vector<1x8x1xf32> -> vector<1x8x18xf32>
    %10 = vector.extract_strided_slice %9 {offsets = [0, 0, 0], sizes = [1, 8, 16], strides = [1, 1, 1]} : vector<1x8x18xf32> to vector<1x8x16xf32>
    %11 = vector.extract_strided_slice %5 {offsets = [0, 0], sizes = [8, 1], strides = [1, 1]} : vector<8x3xf32> to vector<8x1xf32>
    %12 = vector.shape_cast %11 : vector<8x1xf32> to vector<1x8x1xf32>
    %13 = vector.broadcast %12 : vector<1x8x1xf32> to vector<1x8x16xf32>
    %14 = arith.mulf %10, %13 : vector<1x8x16xf32>
    %15 = vector.extract_strided_slice %9 {offsets = [0, 0, 1], sizes = [1, 8, 16], strides = [1, 1, 1]} : vector<1x8x18xf32> to vector<1x8x16xf32>
    %16 = vector.extract_strided_slice %5 {offsets = [0, 1], sizes = [8, 1], strides = [1, 1]} : vector<8x3xf32> to vector<8x1xf32>
    %17 = vector.shape_cast %16 : vector<8x1xf32> to vector<1x8x1xf32>
    %18 = vector.broadcast %17 : vector<1x8x1xf32> to vector<1x8x16xf32>
    %19 = arith.mulf %15, %18 : vector<1x8x16xf32>
    %20 = arith.addf %14, %19 : vector<1x8x16xf32>
    %21 = vector.extract_strided_slice %9 {offsets = [0, 0, 2], sizes = [1, 8, 16], strides = [1, 1, 1]} : vector<1x8x18xf32> to vector<1x8x16xf32>
    %22 = vector.extract_strided_slice %5 {offsets = [0, 2], sizes = [8, 1], strides = [1, 1]} : vector<8x3xf32> to vector<8x1xf32>
    %23 = vector.shape_cast %22 : vector<8x1xf32> to vector<1x8x1xf32>
    %24 = vector.broadcast %23 : vector<1x8x1xf32> to vector<1x8x16xf32>
    %25 = arith.mulf %21, %24 : vector<1x8x16xf32>
    %26 = arith.addf %20, %25 : vector<1x8x16xf32>
    %27 = vector.shape_cast %7 : vector<8x1xf32> to vector<1x8x1xf32>
    %28 = vector.broadcast %27 : vector<1x8x1xf32> to vector<1x8x16xf32>
    %29 = arith.addf %26, %28 : vector<1x8x16xf32>
    %cst_8 = arith.constant 0.000000e+00 : f32
    %30 = vector.broadcast %cst_8 : f32 to vector<1x8x16xf32>
    %31 = arith.maximumf %29, %30 : vector<1x8x16xf32>
    %c0_9 = arith.constant 0 : index
    %c0_10 = arith.constant 0 : index
    %c0_11 = arith.constant 0 : index
    %32 = vector.load %arg4[%c0_9, %c0_10, %c0_11] : memref<2x8x3xf32, #tpu.memory_space<vmem>>, vector<1x8x3xf32>
    %33 = vector.shape_cast %32 : vector<1x8x3xf32> to vector<8x3xf32>
    %c0_12 = arith.constant 0 : index
    %c0_13 = arith.constant 0 : index
    %c0_14 = arith.constant 0 : index
    %34 = vector.load %arg5[%c0_12, %c0_13, %c0_14] : memref<2x8x1xf32, #tpu.memory_space<vmem>>, vector<1x8x1xf32>
    %35 = vector.shape_cast %34 : vector<1x8x1xf32> to vector<8x1xf32>
    %cst_15 = arith.constant 0.000000e+00 : f32
    %36 = vector.broadcast %cst_15 : f32 to vector<1x8x1xf32>
    %37 = tpu.concatenate %36, %31, %36 in 2 : vector<1x8x1xf32>, vector<1x8x16xf32>, vector<1x8x1xf32> -> vector<1x8x18xf32>
    %38 = vector.extract_strided_slice %37 {offsets = [0, 0, 0], sizes = [1, 8, 16], strides = [1, 1, 1]} : vector<1x8x18xf32> to vector<1x8x16xf32>
    %39 = vector.extract_strided_slice %33 {offsets = [0, 0], sizes = [8, 1], strides = [1, 1]} : vector<8x3xf32> to vector<8x1xf32>
    %40 = vector.shape_cast %39 : vector<8x1xf32> to vector<1x8x1xf32>
    %41 = vector.broadcast %40 : vector<1x8x1xf32> to vector<1x8x16xf32>
    %42 = arith.mulf %38, %41 : vector<1x8x16xf32>
    %43 = vector.extract_strided_slice %37 {offsets = [0, 0, 1], sizes = [1, 8, 16], strides = [1, 1, 1]} : vector<1x8x18xf32> to vector<1x8x16xf32>
    %44 = vector.extract_strided_slice %33 {offsets = [0, 1], sizes = [8, 1], strides = [1, 1]} : vector<8x3xf32> to vector<8x1xf32>
    %45 = vector.shape_cast %44 : vector<8x1xf32> to vector<1x8x1xf32>
    %46 = vector.broadcast %45 : vector<1x8x1xf32> to vector<1x8x16xf32>
    %47 = arith.mulf %43, %46 : vector<1x8x16xf32>
    %48 = arith.addf %42, %47 : vector<1x8x16xf32>
    %49 = vector.extract_strided_slice %37 {offsets = [0, 0, 2], sizes = [1, 8, 16], strides = [1, 1, 1]} : vector<1x8x18xf32> to vector<1x8x16xf32>
    %50 = vector.extract_strided_slice %33 {offsets = [0, 2], sizes = [8, 1], strides = [1, 1]} : vector<8x3xf32> to vector<8x1xf32>
    %51 = vector.shape_cast %50 : vector<8x1xf32> to vector<1x8x1xf32>
    %52 = vector.broadcast %51 : vector<1x8x1xf32> to vector<1x8x16xf32>
    %53 = arith.mulf %49, %52 : vector<1x8x16xf32>
    %54 = arith.addf %48, %53 : vector<1x8x16xf32>
    %55 = vector.shape_cast %35 : vector<8x1xf32> to vector<1x8x1xf32>
    %56 = vector.broadcast %55 : vector<1x8x1xf32> to vector<1x8x16xf32>
    %57 = arith.addf %54, %56 : vector<1x8x16xf32>
    %cst_16 = arith.constant 0.000000e+00 : f32
    %58 = vector.broadcast %cst_16 : f32 to vector<1x8x16xf32>
    %59 = arith.maximumf %57, %58 : vector<1x8x16xf32>
    %60 = arith.addf %59, %3 : vector<1x8x16xf32>
    %c1 = arith.constant 1 : index
    %c0_17 = arith.constant 0 : index
    %c0_18 = arith.constant 0 : index
    %61 = vector.load %arg2[%c1, %c0_17, %c0_18] : memref<2x8x3xf32, #tpu.memory_space<vmem>>, vector<1x8x3xf32>
    %62 = vector.shape_cast %61 : vector<1x8x3xf32> to vector<8x3xf32>
    %c1_19 = arith.constant 1 : index
    %c0_20 = arith.constant 0 : index
    %c0_21 = arith.constant 0 : index
    %63 = vector.load %arg3[%c1_19, %c0_20, %c0_21] : memref<2x8x1xf32, #tpu.memory_space<vmem>>, vector<1x8x1xf32>
    %64 = vector.shape_cast %63 : vector<1x8x1xf32> to vector<8x1xf32>
    %cst_22 = arith.constant 0.000000e+00 : f32
    %65 = vector.broadcast %cst_22 : f32 to vector<1x8x2xf32>
    %66 = tpu.concatenate %65, %60, %65 in 2 : vector<1x8x2xf32>, vector<1x8x16xf32>, vector<1x8x2xf32> -> vector<1x8x20xf32>
    %67 = vector.extract_strided_slice %66 {offsets = [0, 0, 0], sizes = [1, 8, 16], strides = [1, 1, 1]} : vector<1x8x20xf32> to vector<1x8x16xf32>
    %68 = vector.extract_strided_slice %62 {offsets = [0, 0], sizes = [8, 1], strides = [1, 1]} : vector<8x3xf32> to vector<8x1xf32>
    %69 = vector.shape_cast %68 : vector<8x1xf32> to vector<1x8x1xf32>
    %70 = vector.broadcast %69 : vector<1x8x1xf32> to vector<1x8x16xf32>
    %71 = arith.mulf %67, %70 : vector<1x8x16xf32>
    %72 = vector.extract_strided_slice %66 {offsets = [0, 0, 2], sizes = [1, 8, 16], strides = [1, 1, 1]} : vector<1x8x20xf32> to vector<1x8x16xf32>
    %73 = vector.extract_strided_slice %62 {offsets = [0, 1], sizes = [8, 1], strides = [1, 1]} : vector<8x3xf32> to vector<8x1xf32>
    %74 = vector.shape_cast %73 : vector<8x1xf32> to vector<1x8x1xf32>
    %75 = vector.broadcast %74 : vector<1x8x1xf32> to vector<1x8x16xf32>
    %76 = arith.mulf %72, %75 : vector<1x8x16xf32>
    %77 = arith.addf %71, %76 : vector<1x8x16xf32>
    %78 = vector.extract_strided_slice %66 {offsets = [0, 0, 4], sizes = [1, 8, 16], strides = [1, 1, 1]} : vector<1x8x20xf32> to vector<1x8x16xf32>
    %79 = vector.extract_strided_slice %62 {offsets = [0, 2], sizes = [8, 1], strides = [1, 1]} : vector<8x3xf32> to vector<8x1xf32>
    %80 = vector.shape_cast %79 : vector<8x1xf32> to vector<1x8x1xf32>
    %81 = vector.broadcast %80 : vector<1x8x1xf32> to vector<1x8x16xf32>
    %82 = arith.mulf %78, %81 : vector<1x8x16xf32>
    %83 = arith.addf %77, %82 : vector<1x8x16xf32>
    %84 = vector.shape_cast %64 : vector<8x1xf32> to vector<1x8x1xf32>
    %85 = vector.broadcast %84 : vector<1x8x1xf32> to vector<1x8x16xf32>
    %86 = arith.addf %83, %85 : vector<1x8x16xf32>
    %cst_23 = arith.constant 0.000000e+00 : f32
    %87 = vector.broadcast %cst_23 : f32 to vector<1x8x16xf32>
    %88 = arith.maximumf %86, %87 : vector<1x8x16xf32>
    %c1_24 = arith.constant 1 : index
    %c0_25 = arith.constant 0 : index
    %c0_26 = arith.constant 0 : index
    %89 = vector.load %arg4[%c1_24, %c0_25, %c0_26] : memref<2x8x3xf32, #tpu.memory_space<vmem>>, vector<1x8x3xf32>
    %90 = vector.shape_cast %89 : vector<1x8x3xf32> to vector<8x3xf32>
    %c1_27 = arith.constant 1 : index
    %c0_28 = arith.constant 0 : index
    %c0_29 = arith.constant 0 : index
    %91 = vector.load %arg5[%c1_27, %c0_28, %c0_29] : memref<2x8x1xf32, #tpu.memory_space<vmem>>, vector<1x8x1xf32>
    %92 = vector.shape_cast %91 : vector<1x8x1xf32> to vector<8x1xf32>
    %cst_30 = arith.constant 0.000000e+00 : f32
    %93 = vector.broadcast %cst_30 : f32 to vector<1x8x2xf32>
    %94 = tpu.concatenate %93, %88, %93 in 2 : vector<1x8x2xf32>, vector<1x8x16xf32>, vector<1x8x2xf32> -> vector<1x8x20xf32>
    %95 = vector.extract_strided_slice %94 {offsets = [0, 0, 0], sizes = [1, 8, 16], strides = [1, 1, 1]} : vector<1x8x20xf32> to vector<1x8x16xf32>
    %96 = vector.extract_strided_slice %90 {offsets = [0, 0], sizes = [8, 1], strides = [1, 1]} : vector<8x3xf32> to vector<8x1xf32>
    %97 = vector.shape_cast %96 : vector<8x1xf32> to vector<1x8x1xf32>
    %98 = vector.broadcast %97 : vector<1x8x1xf32> to vector<1x8x16xf32>
    %99 = arith.mulf %95, %98 : vector<1x8x16xf32>
    %100 = vector.extract_strided_slice %94 {offsets = [0, 0, 2], sizes = [1, 8, 16], strides = [1, 1, 1]} : vector<1x8x20xf32> to vector<1x8x16xf32>
    %101 = vector.extract_strided_slice %90 {offsets = [0, 1], sizes = [8, 1], strides = [1, 1]} : vector<8x3xf32> to vector<8x1xf32>
    %102 = vector.shape_cast %101 : vector<8x1xf32> to vector<1x8x1xf32>
    %103 = vector.broadcast %102 : vector<1x8x1xf32> to vector<1x8x16xf32>
    %104 = arith.mulf %100, %103 : vector<1x8x16xf32>
    %105 = arith.addf %99, %104 : vector<1x8x16xf32>
    %106 = vector.extract_strided_slice %94 {offsets = [0, 0, 4], sizes = [1, 8, 16], strides = [1, 1, 1]} : vector<1x8x20xf32> to vector<1x8x16xf32>
    %107 = vector.extract_strided_slice %90 {offsets = [0, 2], sizes = [8, 1], strides = [1, 1]} : vector<8x3xf32> to vector<8x1xf32>
    %108 = vector.shape_cast %107 : vector<8x1xf32> to vector<1x8x1xf32>
    %109 = vector.broadcast %108 : vector<1x8x1xf32> to vector<1x8x16xf32>
    %110 = arith.mulf %106, %109 : vector<1x8x16xf32>
    %111 = arith.addf %105, %110 : vector<1x8x16xf32>
    %112 = vector.shape_cast %92 : vector<8x1xf32> to vector<1x8x1xf32>
    %113 = vector.broadcast %112 : vector<1x8x1xf32> to vector<1x8x16xf32>
    %114 = arith.addf %111, %113 : vector<1x8x16xf32>
    %cst_31 = arith.constant 0.000000e+00 : f32
    %115 = vector.broadcast %cst_31 : f32 to vector<1x8x16xf32>
    %116 = arith.maximumf %114, %115 : vector<1x8x16xf32>
    %117 = arith.addf %116, %60 : vector<1x8x16xf32>
    %118 = vector.shape_cast %117 : vector<1x8x16xf32> to vector<8x16xf32>
    %119 = tpu.transpose %118, [1, 0] : vector<8x16xf32> -> vector<16x8xf32>
    %120 = arith.truncf %119 : vector<16x8xf32> to vector<16x8xbf16>
    %c0_32 = arith.constant 0 : index
    %c0_33 = arith.constant 0 : index
    %121 = vector.load %arg6[%c0_32, %c0_33] : memref<8x32xbf16, #tpu.memory_space<vmem>>, vector<8x32xbf16>
    %cst_34 = arith.constant dense<0.000000e+00> : vector<16x32xf32>
    %122 = tpu.matmul %120, %121, %cst_34 {dimension_numbers = #tpu.dot_dimension_numbers<[1], [0], [0], [1], [0, 0, 1, 1], [], []>} : vector<16x8xbf16>, vector<8x32xbf16>, vector<16x32xf32> -> vector<16x32xf32>
    %c0_35 = arith.constant 0 : index
    %c0_36 = arith.constant 0 : index
    %123 = vector.load %arg7[%c0_35, %c0_36] : memref<1x32xf32, #tpu.memory_space<vmem>>, vector<1x32xf32>
    %124 = vector.broadcast %123 : vector<1x32xf32> to vector<16x32xf32>
    %125 = arith.addf %122, %124 : vector<16x32xf32>
    %cst_37 = arith.constant 0.000000e+00 : f32
    %126 = vector.broadcast %cst_37 : f32 to vector<16x32xf32>
    %127 = arith.maximumf %125, %126 : vector<16x32xf32>
    %128 = arith.truncf %127 : vector<16x32xf32> to vector<16x32xbf16>
    %c0_38 = arith.constant 0 : index
    %c0_39 = arith.constant 0 : index
    %129 = vector.load %arg8[%c0_38, %c0_39] : memref<32x8xbf16, #tpu.memory_space<vmem>>, vector<32x8xbf16>
    %cst_40 = arith.constant dense<0.000000e+00> : vector<16x8xf32>
    %130 = tpu.matmul %128, %129, %cst_40 {dimension_numbers = #tpu.dot_dimension_numbers<[1], [0], [0], [1], [0, 0, 1, 1], [], []>} : vector<16x32xbf16>, vector<32x8xbf16>, vector<16x8xf32> -> vector<16x8xf32>
    %c0_41 = arith.constant 0 : index
    %c0_42 = arith.constant 0 : index
    %131 = vector.load %arg9[%c0_41, %c0_42] : memref<1x8xf32, #tpu.memory_space<vmem>>, vector<1x8xf32>
    %132 = vector.broadcast %131 : vector<1x8xf32> to vector<16x8xf32>
    %133 = arith.addf %130, %132 : vector<16x8xf32>
    %134 = vector.shape_cast %133 : vector<16x8xf32> to vector<1x16x8xf32>
    %c0_43 = arith.constant 0 : index
    %c0_44 = arith.constant 0 : index
    %c0_45 = arith.constant 0 : index
    %135 = vector.load %arg10[%c0_43, %c0_44, %c0_45] : memref<1x16x8xf32, #tpu.memory_space<vmem>>, vector<1x16x8xf32>
    tpu.vector_store %arg10[%c0_43, %c0_44, %c0_45], %134 {strides = array<i32>} : memref<1x16x8xf32, #tpu.memory_space<vmem>>, vector<1x16x8xf32>,
    return
  }
  func.func @transform_0(%arg0: i32) -> (i32, i32, i32) {
    %c0_i32 = arith.constant 0 : i32
    %c0_i32_0 = arith.constant 0 : i32
    %c0_i32_1 = arith.constant 0 : i32
    return %arg0, %c0_i32, %c0_i32_0 : i32, i32, i32
  }
  func.func @transform_1(%arg0: i32) -> (i32, i32, i32) {
    %c0_i32 = arith.constant 0 : i32
    %c0_i32_0 = arith.constant 0 : i32
    %c0_i32_1 = arith.constant 0 : i32
    %c0_i32_2 = arith.constant 0 : i32
    return %c0_i32, %c0_i32_0, %c0_i32_1 : i32, i32, i32
  }
  func.func @transform_2(%arg0: i32) -> (i32, i32, i32) {
    %c0_i32 = arith.constant 0 : i32
    %c0_i32_0 = arith.constant 0 : i32
    %c0_i32_1 = arith.constant 0 : i32
    %c0_i32_2 = arith.constant 0 : i32
    return %c0_i32, %c0_i32_0, %c0_i32_1 : i32, i32, i32
  }
  func.func @transform_3(%arg0: i32) -> (i32, i32, i32) {
    %c0_i32 = arith.constant 0 : i32
    %c0_i32_0 = arith.constant 0 : i32
    %c0_i32_1 = arith.constant 0 : i32
    %c0_i32_2 = arith.constant 0 : i32
    return %c0_i32, %c0_i32_0, %c0_i32_1 : i32, i32, i32
  }
  func.func @transform_4(%arg0: i32) -> (i32, i32, i32) {
    %c0_i32 = arith.constant 0 : i32
    %c0_i32_0 = arith.constant 0 : i32
    %c0_i32_1 = arith.constant 0 : i32
    %c0_i32_2 = arith.constant 0 : i32
    return %c0_i32, %c0_i32_0, %c0_i32_1 : i32, i32, i32
  }
  func.func @transform_5(%arg0: i32) -> (i32, i32) {
    %c0_i32 = arith.constant 0 : i32
    %c0_i32_0 = arith.constant 0 : i32
    %c0_i32_1 = arith.constant 0 : i32
    return %c0_i32, %c0_i32_0 : i32, i32
  }
  func.func @transform_6(%arg0: i32) -> (i32, i32) {
    %c0_i32 = arith.constant 0 : i32
    %c0_i32_0 = arith.constant 0 : i32
    %c0_i32_1 = arith.constant 0 : i32
    return %c0_i32, %c0_i32_0 : i32, i32
  }
  func.func @transform_7(%arg0: i32) -> (i32, i32) {
    %c0_i32 = arith.constant 0 : i32
    %c0_i32_0 = arith.constant 0 : i32
    %c0_i32_1 = arith.constant 0 : i32
    return %c0_i32, %c0_i32_0 : i32, i32
  }
  func.func @transform_8(%arg0: i32) -> (i32, i32) {
    %c0_i32 = arith.constant 0 : i32
    %c0_i32_0 = arith.constant 0 : i32
    %c0_i32_1 = arith.constant 0 : i32
    return %c0_i32, %c0_i32_0 : i32, i32
  }
  func.func @transform_9(%arg0: i32) -> (i32, i32, i32) {
    %c0_i32 = arith.constant 0 : i32
    %c0_i32_0 = arith.constant 0 : i32
    %c0_i32_1 = arith.constant 0 : i32
    return %arg0, %c0_i32, %c0_i32_0 : i32, i32, i32
  }
}

</mosaic_0001>

<bundles_post_ra>
// kernel: model_forward.1
= control target key start
LH: loop header
LB: loop body
LE: loop exit
PB: predicated region body
PF: predicated region fallthrough
CT: control target
= control target key end

     0   :  { %s830_s30 = smov 0   ;;  %s928_s0 = inlined_call_operand.vmem [shape: f32[2,16,8], index: 0, kind: input, shape index: {}]   ;;  %s929_s1 = inlined_call_operand.vmem [shape: f32[2,8,3], index: 1, kind: input, shape index: {}]   ;;  %s930_s2 = inlined_call_operand.vmem [shape: f32[2,8,1], index: 2, kind: input, shape index: {}]   ;;  %s931_s3 = inlined_call_operand.vmem [shape: f32[2,8,3], index: 3, kind: input, shape index: {}]   ;;  %s932_s4 = inlined_call_operand.vmem [shape: f32[2,8,1], index: 4, kind: input, shape index: {}]   ;;  %s933_s5 = inlined_call_operand.vmem [shape: bf16[8,32], index: 5, kind: input, shape index: {}]   ;;  %s934_s6 = inlined_call_operand.vmem [shape: f32[1,32], index: 6, kind: input, shape index: {}]   ;;  %s935_s7 = inlined_call_operand.vmem [shape: bf16[32,8], index: 7, kind: input, shape index: {}]   ;;  %s936_s8 = inlined_call_operand.vmem [shape: f32[1,8], index: 8, kind: input, shape index: {}]   ;;  %s937_s9 = inlined_call_operand.vmem [shape: f32[2,16,8], index: 9, kind: output, shape index: {}]  }
   0x1 LB: > { %s700_s10 = sadd.s32 4294967295, %s770_s30   ;;  %p704_p0 = scmp.ge.s32.totalorder %s770_s30, 1  ;;  %s770_s30 = sphi %s830_s30, %s19_s30  }
   0x2   : > { %p287_p1 = scmp.lt.s32.totalorder %s770_s30, 3 }
   0x4   : > { %p288_p2 = pnand %p704_p0, %p287_p1 }
   0x5   : > { %p323_p3 = scmp.lt.s32.totalorder (!%p288_p2), %s700_s10, 1  ;;  %s775_s17 = smov (!%p288_p2), 1  }
   0x6   : > { %291 = sbr.rel (%p288_p2) target bundleno = 1587 (0x633), region = 56  ;;  %s776_s20 = smov (!%p288_p2), 126  }
   0x7   : > { %s777_s21 = smov (!%p288_p2), 127   ;;  %s778_s28 = smov (!%p288_p2), 2  }
   0x8   : > { %s779_s13 = smov (!%p288_p2), 124  }
   0xb   : > { %s939_s10 = smov (!%p323_p3, %s700_s10), 1  ;;  %v772_v2 = vmov 1   ;;  %v368_v3 = vld [vmem:[%s929_s1] sm:$0xff]  ;;  %v773_v4 = vmov 2   ;;  %v774_v5 = vmov 0   ;;  %vm374_vm0 = vcmask 7168  }
   0xc   : > { %s725_s11 = sshll.u32 %s939_s10, 4  ;;  %746 = vset.pattern.permute.xlu1 %v772_v2  ;;  %747 = vset.pattern.permute.xlu2 %v773_v4  ;;  %v369_v7 = vld [vmem:[%s930_s2] sm:$0xff]  ;;  %vm376_vm1 = vcmask 138240   ;;  %v709_v33 = vld [vmem:[%s929_s1 + $0x8] sm:$0xff]  ;;  %vm461_vm2 = vcmask 15360   ;;  %vm463_vm3 = vcmask 146432  }
   0xd   : > { %s327_s14 = scalar_lea.vmem %s928_s0, %s725_s11  ;;  %395 = vperm.xlu2 %747, %v368_v3   ;;  %v411_v15 = vld [vmem:[%s931_s3] sm:$0xff]  ;;  %v710_v51 = vld [vmem:[%s930_s2 + $0x8] sm:$0xff]  ;;  %vm584_vm4 = vcmask 1043456   ;;  %vm580_vm5 = vcmask 64512   ;;  %vm625_vm6 = vcmask 261120   ;;  %s332_s12 = scalar_lea.vmem %s937_s9, %s725_s11 }
   0xe   : > { %v334_v0 = vld [vmem:[%s327_s14] sm:$0xff]  ;;  %v335_v1 = vld [vmem:[%s327_s14 + $0x8] sm:$0xff] }
   0xf   : > { %336 = vxpose.xlu0.b32.start [1/2] (short) (narrow) %v334_v0, 8  ;;  %v412_v32 = vld [vmem:[%s932_s4] sm:$0xff]  ;;  %v711_v52 = vld [vmem:[%s931_s3 + $0x8] sm:$0xff] }
  0x15   : > { %748 = vset.pattern.permute.xlu2 %v774_v5 }
  0x16   : > { %380 = vperm.xlu2 %748, %v368_v3  }
  0x17   : > { %337 = vxpose.xlu0.b32.end [2/2] (short) (narrow) %v335_v1, 8 }
  0x1e   : > { %406 = vperm.xlu2 %748, %v369_v7  }
  0x26   : > { %749 = vset.pattern.permute.xlu2 %v772_v2 }
  0x27   : > { %426 = vperm.xlu2 %749, %v411_v15  }
  0x2f   : > { %751 = vset.pattern.permute.xlu2 %v774_v5 }
  0x30   : > { %421 = vperm.xlu2 %751, %v411_v15  }
  0x38   : > { %754 = vset.pattern.permute.xlu2 %v773_v4 }
  0x67   : > { %v396_v10 = vpop.permute.xlu2 %395 }
  0x70   : > { %v381_v16 = vpop.permute.xlu2 %380 }
  0x78   : > { %v407_v22 = vpop.permute.xlu2 %406 }
  0x7e   : > { %761 = vset.pattern.permute.xlu0 %v774_v5 }
  0x81   : > { %v427_v27 = vpop.permute.xlu2 %426 }
  0x8a   : > { %v422_v34 = vpop.permute.xlu2 %421 }
  0xb3   : > { %v852_v6 = vpop.trf.xlu0 }
  0xb4   : > { %371 = vrot.lane.b32.xlu1 %v852_v6, %s775_s17 }
  0xbc   : > { %385 = vperm.xlu1 %746, %v368_v3  }
  0xc4   : > { %750 = vset.pattern.permute.xlu1 %v773_v4 }
 0x126   : > { %v372_v8 = vpop.permute.xlu1 %371 }
 0x127   : > { %v375_v9 = vsel %vm374_vm0, 0.0, %v372_v8 }
 0x128   : > { %v377_v11 = vsel %vm376_vm1, %v375_v9, 0.0 }
 0x129   : > { %v398_v12 = vmul.f32 %v396_v10, %v377_v11  ;;  %v383_v17 = vmul.f32 %v381_v16, %v377_v11  ;;  %v575_v16 = vld [vmem:[%s933_s5] sm:$0xf] }
 0x12b   : > { %400 = vrot.lane.b32.xlu1 %v398_v12, %s776_s20 }
 0x12e   : > { %v386_v13 = vpop.permute.xlu1 %385 }
 0x12f   : > { %v388_v14 = vmul.f32 %v386_v13, %v377_v11 }
 0x131   : > { %390 = vrot.lane.b32.xlu0 %v388_v14, %s777_s21 }
 0x19d   : > { %v401_v20 = vpop.permute.xlu1 %400 }
 0x1a3   : > { %v391_v18 = vpop.permute.xlu0 %390 }
 0x1a4   : > { %v393_v19 = vadd.f32 %v391_v18, %v383_v17  ;;  %v586_v17 = vsel %vm584_vm4, %v575_v16, 0 }
 0x1a5   : > { %595 = vmatpush.bf16.msra.mxu0 %v586_v17 }
 0x1a6   : > { %v403_v21 = vadd.f32 %v401_v20, %v393_v19 }
 0x1a8   : > { %v409_v23 = vadd.f32 %v407_v22, %v403_v21  ;;  %v728_v21 = vld [vmem:[%s935_s7 + $0x8] sm:$0xff]  ;;  %v727_v22 = vld [vmem:[%s935_s7] sm:$0xff] }
 0x1a9   : > { %635 = vmatpush.bf16.msra.mxu1 %v728_v21 }
 0x1aa   : > { %v410_v24 = vmax.f32 %v409_v23, 0.0 }
 0x1ac   : > { %414 = vrot.lane.b32.xlu1 %v410_v24, %s775_s17  ;;  %v762_v24 = vld [vmem:[%s934_s6] ss:$0 sm:$0xff] }
 0x1ad   : > { %636 = vmatpush.bf16.msra.mxu1 %v727_v22 }
 0x1b4   : > { %436 = vperm.xlu1 %750, %v411_v15  }
 0x1bc   : > { %752 = vset.pattern.permute.xlu1 %v774_v5 }
 0x21e   : > { %v415_v25 = vpop.permute.xlu1 %414 }
 0x21f   : > { %v417_v26 = vsel %vm374_vm0, 0.0, %v415_v25 }
 0x220   : > { %v418_v28 = vsel %vm376_vm1, %v417_v26, 0.0 }
 0x221   : > { %v429_v29 = vmul.f32 %v427_v27, %v418_v28  ;;  %v424_v36 = vmul.f32 %v422_v34, %v418_v28 }
 0x223   : > { %431 = vrot.lane.b32.xlu1 %v429_v29, %s777_s21 }
 0x226   : > { %v437_v30 = vpop.permute.xlu1 %436 }
 0x227   : > { %v439_v31 = vmul.f32 %v437_v30, %v418_v28 }
 0x229   : > { %441 = vrot.lane.b32.xlu2 %v439_v31, %s776_s20  ;;  %v763_v31 = vld [vmem:[%s936_s8] ss:$0 sm:$0xff] }
 0x22b   : > { %447 = vperm.xlu1 %752, %v412_v32  }
 0x233   : > { %753 = vset.pattern.permute.xlu1 %v772_v2 }
 0x234   : > { %472 = vperm.xlu1 %753, %v709_v33  }
 0x23c   : > { %755 = vset.pattern.permute.xlu1 %v774_v5 }
 0x23d   : > { %467 = vperm.xlu1 %755, %v709_v33  }
 0x245   : > { %758 = vset.pattern.permute.xlu1 %v773_v4 }
 0x283   : > { %v442_v38 = vpop.permute.xlu2 %441 }
 0x295   : > { %v432_v35 = vpop.permute.xlu1 %431 }
 0x296   : > { %v434_v37 = vadd.f32 %v432_v35, %v424_v36 }
 0x298   : > { %v444_v39 = vadd.f32 %v442_v38, %v434_v37 }
 0x29d   : > { %v448_v40 = vpop.permute.xlu1 %447 }
 0x29e   : > { %v450_v41 = vadd.f32 %v448_v40, %v444_v39 }
 0x2a0   : > { %v451_v42 = vmax.f32 %v450_v41, 0.0 }
 0x2a2   : > { %v452_v43 = vadd.f32 %v451_v42, %v852_v6  ;;  %v712_v6 = vld [vmem:[%s932_s4 + $0x8] sm:$0xff] }
 0x2a4   : > { %458 = vrot.lane.b32.xlu2 %v452_v43, %s778_s28 }
 0x2a6   : > { %v473_v46 = vpop.permute.xlu1 %472 }
 0x2ac   : > { %482 = vperm.xlu2 %754, %v709_v33  }
 0x2af   : > { %v468_v53 = vpop.permute.xlu1 %467 }
 0x2b4   : > { %756 = vset.pattern.permute.xlu2 %v774_v5 }
 0x2fe   : > { %v459_v44 = vpop.permute.xlu2 %458 }
 0x2ff   : > { %v462_v45 = vsel %vm461_vm2, 0.0, %v459_v44 }
 0x300   : > { %v464_v47 = vsel %vm463_vm3, %v462_v45, 0.0 }
 0x301   : > { %v475_v48 = vmul.f32 %v473_v46, %v464_v47  ;;  %v470_v55 = vmul.f32 %v468_v53, %v464_v47 }
 0x303   : > { %477 = vrot.lane.b32.xlu2 %v475_v48, %s776_s20 }
 0x306   : > { %v483_v49 = vpop.permute.xlu2 %482 }
 0x307   : > { %v485_v50 = vmul.f32 %v483_v49, %v464_v47 }
 0x309   : > { %487 = vrot.lane.b32.xlu1 %v485_v50, %s779_s13 }
 0x30b   : > { %493 = vperm.xlu2 %756, %v710_v51  }
 0x313   : > { %757 = vset.pattern.permute.xlu2 %v772_v2 }
 0x314   : > { %515 = vperm.xlu2 %757, %v711_v52  }
 0x31c   : > { %759 = vset.pattern.permute.xlu2 %v774_v5 }
 0x31d   : > { %510 = vperm.xlu2 %759, %v711_v52  }
 0x35d   : > { %v478_v54 = vpop.permute.xlu2 %477 }
 0x35e   : > { %v480_v56 = vadd.f32 %v478_v54, %v470_v55 }
 0x365   : > { %v494_v58 = vpop.permute.xlu2 %493 }
 0x36e   : > { %v516_v0 = vpop.permute.xlu2 %515 }
 0x377   : > { %v511_v7 = vpop.permute.xlu2 %510 }
 0x37b   : > { %v488_v57 = vpop.permute.xlu1 %487 }
 0x37c   : > { %v490_v59 = vadd.f32 %v488_v57, %v480_v56 }
 0x37e   : > { %v496_v60 = vadd.f32 %v494_v58, %v490_v59 }
 0x380   : > { %v497_v61 = vmax.f32 %v496_v60, 0.0 }
 0x382   : > { %503 = vrot.lane.b32.xlu1 %v497_v61, %s778_s28 }
 0x38a   : > { %525 = vperm.xlu1 %758, %v711_v52  }
 0x392   : > { %760 = vset.pattern.permute.xlu1 %v774_v5 }
 0x3f4   : > { %v504_v62 = vpop.permute.xlu1 %503 }
 0x3f5   : > { %v506_v63 = vsel %vm461_vm2, 0.0, %v504_v62 }
 0x3f6   : > { %v507_v1 = vsel %vm463_vm3, %v506_v63, 0.0 }
 0x3f7   : > { %v518_v2 = vmul.f32 %v516_v0, %v507_v1  ;;  %v513_v5 = vmul.f32 %v511_v7, %v507_v1 }
 0x3f9   : > { %520 = vrot.lane.b32.xlu1 %v518_v2, %s776_s20 }
 0x3fc   : > { %v526_v3 = vpop.permute.xlu1 %525 }
 0x3fd   : > { %v528_v4 = vmul.f32 %v526_v3, %v507_v1 }
 0x3ff   : > { %530 = vrot.lane.b32.xlu2 %v528_v4, %s779_s13 }
 0x401   : > { %536 = vperm.xlu1 %760, %v712_v6  }
 0x459   : > { %v531_v10 = vpop.permute.xlu2 %530 }
 0x46b   : > { %v521_v8 = vpop.permute.xlu1 %520 }
 0x46c   : > { %v523_v9 = vadd.f32 %v521_v8, %v513_v5 }
 0x46e   : > { %v533_v11 = vadd.f32 %v531_v10, %v523_v9 }
 0x473   : > { %v537_v12 = vpop.permute.xlu1 %536 }
 0x474   : > { %v539_v13 = vadd.f32 %v537_v12, %v533_v11 }
 0x476   : > { %v540_v14 = vmax.f32 %v539_v13, 0.0 }
 0x478   : > { %v541_v15 = vadd.f32 %v540_v14, %v452_v43 }
 0x47a   : > { %542 = vxpose.xlu2.b32.start.end [1/1] (short) (narrow) %v541_v15, 16 }
 0x513   : > { %v558_v18 = vpop.trf.xlu2 }
 0x51b   : > { %v559_v19 = vpop.trf.xlu2 }
 0x51c   : > { %v574_v20 = vpack.c.bf16 %v559_v19, %v558_v18 }
 0x51e   : > { %713 = vmatmul.msk.bf16.vlgmr.msra.gmra.mxu0 %vm580_vm5, %v574_v20 }
 0x59b   : > { %v597_v23 = vpop.f32.mrf.mxu0 }
 0x59c   : > { %v598_v25 = vadd.f32 %v762_v24, %v597_v23 }
 0x59e   : > { %v602_v28 = vmax.f32 %v598_v25, 0.0 }
 0x5a3   : > { %v599_v26 = vpop.f32.mrf.mxu0 }
 0x5a4   : > { %v600_v27 = vadd.f32 %v762_v24, %v599_v26 }
 0x5a6   : > { %v603_v29 = vmax.f32 %v600_v27, 0.0 }
 0x5a8   : > { %v604_v30 = vpack.c.bf16 %v603_v29, %v602_v28 }
 0x5aa   : > { %722 = vmatmul.msk.bf16.vlgmr.msra.gmra.mxu1 %vm625_vm6, %v604_v30 }
 0x627   : > { %v638_v32 = vpop.f32.mrf.mxu1 }
 0x628   : > { %v639_v33 = vadd.f32 %v763_v31, %v638_v32 }
 0x62a   : > { %643 = vst.msk [vmem:[%s332_s12] sm:$0xff] %vm580_vm5, %v639_v33 }
 0x62f   : > { %v640_v34 = vpop.f32.mrf.mxu1 }
 0x630   : > { %v641_v35 = vadd.f32 %v763_v31, %v640_v34 }
 0x632   : > { %644 = vst.msk [vmem:[%s332_s12 + $0x8] sm:$0xff] %vm580_vm5, %v641_v35 }
 0x633 PF: > { %s19_s30 = sadd.s32 1, %s770_s30  }
 0x634   : > { %p16_p4 = scmp.ge.s32.totalorder %s19_s30, 4  }
 0x636   :  { %18 = sbr.rel (!%p16_p4) target bundleno = 1 (0x1), region = 90 }

</bundles_post_ra>
